<compile_context>
chip_gen: v6e
topology: v6e:2x2x1
jax: 0.10.0
libtpu: 0.0.40
codegen_flags: <defaults>
</compile_context>

<pallas_src>
import functools
import math

import jax
import jax.numpy as jnp
from jax.experimental import pallas as pl
from jax.experimental.pallas import tpu as pltpu

EMBED_SIZE = 512
SCALE = 32.0            # SoftmaxBuilder sets scale = 32
L_A, U_A = 10.0, 110.0
L_MARGIN, U_MARGIN = 0.45, 0.8
EPS = 1e-12             # F.normalize default eps


# --------------------------------------------------------------------------
# Stage 1: batch-invariant stats (runs once, tiny).
# --------------------------------------------------------------------------
def _x_stats_kernel(x_ref, xn_ref, cosm_ref, sinm_ref, xnorm_ref):
    x = x_ref[...].astype(jnp.float32)                       # (B, K)
    sum_sq = jnp.sum(x * x, axis=1, keepdims=True)           # (B, 1)
    x_norm = jnp.sqrt(sum_sq)
    x_norm_c = jnp.clip(x_norm, L_A, U_A)

    # adaptive margin m(x_norm)
    ada = (U_MARGIN - L_MARGIN) / (U_A - L_A) * (x_norm_c - L_A) + L_MARGIN
    cosm_ref[...] = jnp.cos(ada)
    sinm_ref[...] = jnp.sin(ada)

    # F.normalize(x): divide by the UNclamped norm (clamped only by eps)
    xn_ref[...] = x * (1.0 / jnp.maximum(x_norm, EPS))
    xnorm_ref[...] = x_norm_c


# --------------------------------------------------------------------------
# Stage 2: stream W in wide class tiles; all x-dependent work is precomputed.
# --------------------------------------------------------------------------
def _mag_logits_kernel(xn_ref, cosm_ref, sinm_ref, w_ref, *out_refs,
                       is_rpcl, f, thred):
    if is_rpcl:
        cos_ref, cos_tm_ref, rival_ref = out_refs
    else:
        cos_ref, cos_tm_ref = out_refs

    x_n = xn_ref[...]                                         # (B, K)  f32
    w = w_ref[...].astype(jnp.float32)                        # (K, TN)

    # F.normalize(W, dim=0) applied as a post-matmul per-column scale:
    #   cos = (x_n @ W) * 1/max(||W_col||, eps)
    col_sq = jnp.sum(w * w, axis=0, keepdims=True)            # (1, TN)
    inv_col = 1.0 / jnp.maximum(jnp.sqrt(col_sq), EPS)

    cos_t = jnp.dot(x_n, w, preferred_element_type=jnp.float32) * inv_col
    cos_t = jnp.clip(cos_t, -1.0, 1.0)
    sin_t = jnp.sqrt(jnp.maximum(1.0 - cos_t * cos_t, 0.0))

    cos_m = cosm_ref[...]                                     # (B, 1)
    sin_m = sinm_ref[...]                                     # (B, 1)

    cos_tm = cos_t * cos_m - sin_t * sin_m
    # easy_margin=True branch of MagLinear
    cos_tm = jnp.where(cos_t > 0.0, cos_tm, cos_t)

    cos_ref[...] = SCALE * cos_t
    cos_tm_ref[...] = SCALE * cos_tm

    if is_rpcl:
        rm = 0.45 * f                                         # static python scalar
        rival = cos_t * math.cos(rm) + sin_t * math.sin(rm)
        rival = jnp.clip(rival, -1.0, 1.0)
        rival = jnp.where(cos_t > thred, rival, cos_t)
        rival_ref[...] = SCALE * rival


def mag_head_forward(x, weight, *, is_rpcl=False, f=0.5, thred=0.7, tn=512):
    """Pallas implementation of SoftmaxBuilder's head (MagLinear / MagLinear_rpcl)."""
    B, K = x.shape
    K2, C = weight.shape
    assert K == K2 == EMBED_SIZE

    # ---- stage 1: x-dependent invariants (single tiny kernel) ----
    x_n, cos_m, sin_m, x_norm_c = pl.pallas_call(
        _x_stats_kernel,
        out_shape=(
            jax.ShapeDtypeStruct((B, K), jnp.float32),
            jax.ShapeDtypeStruct((B, 1), jnp.float32),
            jax.ShapeDtypeStruct((B, 1), jnp.float32),
            jax.ShapeDtypeStruct((B, 1), jnp.float32),
        ),
    )(x)

    # ---- stage 2: wide class tiles over W ----
    tn_eff = max(128, min(int(tn), ((C + 127) // 128) * 128))
    tn_eff = ((tn_eff + 127) // 128) * 128          # lane-aligned tile width
    c_pad = ((C + tn_eff - 1) // tn_eff) * tn_eff   # pad class dim to tile multiple
    w = weight if c_pad == C else jnp.pad(weight, ((0, 0), (0, c_pad - C)))

    n_out = 3 if is_rpcl else 2
    kernel = functools.partial(_mag_logits_kernel, is_rpcl=is_rpcl, f=f, thred=thred)

    logit_shape = jax.ShapeDtypeStruct((B, c_pad), jnp.float32)
    logit_spec = pl.BlockSpec((B, tn_eff), lambda j: (0, j))

    # Raise the scoped VMEM limit only if large tiles need it (v5e default is 16 MiB).
    est_vmem = (2 * K * tn_eff * w.dtype.itemsize          # W tile, double-buffered
                + 2 * B * K * 4                            # x_n block
                + n_out * 2 * B * tn_eff * 4               # logit output tiles
                + (1 << 20))                               # headroom / small blocks
    cp_kwargs = dict(dimension_semantics=("parallel",))    # no revisited outputs
    if est_vmem > (12 << 20):
        cp_kwargs["vmem_limit_bytes"] = min(int(est_vmem * 3 // 2), 48 << 20)

    outs = pl.pallas_call(
        kernel,
        out_shape=tuple([logit_shape] * n_out),
        grid_spec=pltpu.PrefetchScalarGridSpec(
            num_scalar_prefetch=0,
            grid=(c_pad // tn_eff,),
            in_specs=[
                pl.BlockSpec((B, K), lambda j: (0, 0)),      # x_n (constant block)
                pl.BlockSpec((B, 1), lambda j: (0, 0)),      # cos_m
                pl.BlockSpec((B, 1), lambda j: (0, 0)),      # sin_m
                pl.BlockSpec((K, tn_eff), lambda j: (0, j)), # weight tile
            ],
            out_specs=tuple([logit_spec] * n_out),
        ),
        compiler_params=pltpu.CompilerParams(**cp_kwargs),
    )(x_n, cos_m, sin_m, w)

    if c_pad != C:
        outs = tuple(o[:, :C] for o in outs)

    return list(outs), x_norm_c


def init_mag_weight(key, class_num):
    """Mimic: uniform_(-1, 1).renorm_(2, 1, 1e-5).mul_(1e5)  (per-column renorm)."""
    w = jax.random.uniform(key, (EMBED_SIZE, class_num), jnp.float32, -1.0, 1.0)
    col_norm = jnp.sqrt(jnp.sum(w * w, axis=0, keepdims=True))
    scale = jnp.where(col_norm > 1e-5, 1e-5 / col_norm, 1.0)
    return w * scale * 1e5


def _ref_forward(x, weight, *, is_rpcl=False, f=0.5, thred=0.7):
    """Pure-JAX reference for correctness checking."""
    x = x.astype(jnp.float32)
    w = weight.astype(jnp.float32)
    x_norm = jnp.sqrt(jnp.sum(x * x, axis=1, keepdims=True))
    x_norm_c = jnp.clip(x_norm, L_A, U_A)
    ada = (U_MARGIN - L_MARGIN) / (U_A - L_A) * (x_norm_c - L_A) + L_MARGIN
    w_n = w / jnp.maximum(jnp.linalg.norm(w, axis=0, keepdims=True), EPS)
    x_n = x / jnp.maximum(x_norm, EPS)
    cos_t = jnp.clip(x_n @ w_n, -1.0, 1.0)
    sin_t = jnp.sqrt(1.0 - cos_t * cos_t)
    cos_tm = cos_t * jnp.cos(ada) - sin_t * jnp.sin(ada)
    cos_tm = jnp.where(cos_t > 0.0, cos_tm, cos_t)
    outs = [SCALE * cos_t, SCALE * cos_tm]
    if is_rpcl:
        rm = 0.45 * f
        rival = jnp.clip(cos_t * math.cos(rm) + sin_t * math.sin(rm), -1.0, 1.0)
        rival = jnp.where(cos_t > thred, rival, cos_t)
        outs.append(SCALE * rival)
    return outs, x_norm_c


if __name__ == "__main__":
    key = jax.random.PRNGKey(0)
    kx, kw1, kw2 = jax.random.split(key, 3)

    B = 8              # batch
    CLASS_NUM = 1024   # multiple-of-128 class count -> 2 class tiles at tn=512

    # Embeddings standing in for iresnet18 features: ||x|| ~ sqrt(512) ~ 22.6,
    # comfortably inside the [l_a, u_a] = [10, 110] clamp range.
    x = jax.random.normal(kx, (B, EMBED_SIZE), jnp.float32)
    weight = init_mag_weight(kw1, CLASS_NUM)

    # --- is_rpcl=False path (MagLinear) ---
    logits, x_norm = mag_head_forward(x, weight, is_rpcl=False)
    jax.block_until_ready((logits, x_norm))
    ref_logits, ref_norm = _ref_forward(x, weight, is_rpcl=False)
    for a, b in zip(logits, ref_logits):
        assert jnp.allclose(a, b, rtol=1e-4, atol=1e-4)
    assert jnp.allclose(x_norm, ref_norm, rtol=1e-4, atol=1e-4)

    # --- is_rpcl=True path (MagLinear_rpcl) ---
    logits_r, x_norm_r = mag_head_forward(x, weight, is_rpcl=True, f=0.5, thred=0.7)
    jax.block_until_ready((logits_r, x_norm_r))
    ref_logits_r, ref_norm_r = _ref_forward(x, weight, is_rpcl=True, f=0.5, thred=0.7)
    for a, b in zip(logits_r, ref_logits_r):
        assert jnp.allclose(a, b, rtol=1e-4, atol=1e-4)
    assert jnp.allclose(x_norm_r, ref_norm_r, rtol=1e-4, atol=1e-4)

    # --- non-multiple-of-128 class count (exercises the padding path) ---
    C_ODD = 200
    weight_odd = init_mag_weight(kw2, C_ODD)
    logits_o, x_norm_o = mag_head_forward(x, weight_odd, is_rpcl=True, f=0.5, thred=0.7)
    jax.block_until_ready((logits_o, x_norm_o))
    ref_logits_o, ref_norm_o = _ref_forward(x, weight_odd, is_rpcl=True, f=0.5, thred=0.7)
    for a, b in zip(logits_o, ref_logits_o):
        assert a.shape == b.shape
        assert jnp.allclose(a, b, rtol=1e-4, atol=1e-4)
    assert jnp.allclose(x_norm_o, ref_norm_o, rtol=1e-4, atol=1e-4)

    print("KERNEL_OK")
</pallas_src>

<mosaic_0001>
module attributes {stable_mosaic.version = 11 : i64} {
  func.func @_x_stats_kernel(%arg0: memref<8x512xf32, #tpu.memory_space<vmem>>, %arg1: memref<8x512xf32, #tpu.memory_space<vmem>>, %arg2: memref<8x1xf32, #tpu.memory_space<vmem>>, %arg3: memref<8x1xf32, #tpu.memory_space<vmem>>, %arg4: memref<8x1xf32, #tpu.memory_space<vmem>>) attributes {dimension_semantics = [], scalar_prefetch = 0 : i64, scratch_operands = 0 : i64, tpu.core_type = #tpu.core_type<tc>} {
    %c0 = arith.constant 0 : index
    %c0_0 = arith.constant 0 : index
    %0 = vector.load %arg0[%c0, %c0_0] : memref<8x512xf32, #tpu.memory_space<vmem>>, vector<8x512xf32>
    %1 = arith.mulf %0, %0 : vector<8x512xf32>
    %cst = arith.constant dense<0.000000e+00> : vector<8xf32>
    %2 = vector.multi_reduction <add>, %1, %cst [1] : vector<8x512xf32> to vector<8xf32>
    %3 = vector.shape_cast %2 : vector<8xf32> to vector<8x1xf32>
    %4 = math.sqrt %3 : vector<8x1xf32>
    %cst_1 = arith.constant 1.000000e+01 : f32
    %cst_2 = arith.constant 1.100000e+02 : f32
    %5 = vector.broadcast %cst_1 : f32 to vector<8x1xf32>
    %6 = arith.maximumf %5, %4 : vector<8x1xf32>
    %7 = vector.broadcast %cst_2 : f32 to vector<8x1xf32>
    %8 = arith.minimumf %7, %6 : vector<8x1xf32>
    %cst_3 = arith.constant 1.000000e+01 : f32
    %9 = vector.broadcast %cst_3 : f32 to vector<8x1xf32>
    %10 = arith.subf %8, %9 : vector<8x1xf32>
    %cst_4 = arith.constant 3.500000e-03 : f32
    %11 = vector.broadcast %cst_4 : f32 to vector<8x1xf32>
    %12 = arith.mulf %11, %10 : vector<8x1xf32>
    %cst_5 = arith.constant 4.500000e-01 : f32
    %13 = vector.broadcast %cst_5 : f32 to vector<8x1xf32>
    %14 = arith.addf %12, %13 : vector<8x1xf32>
    %15 = math.cos %14 : vector<8x1xf32>
    %c0_6 = arith.constant 0 : index
    %c0_7 = arith.constant 0 : index
    %16 = vector.load %arg2[%c0_6, %c0_7] : memref<8x1xf32, #tpu.memory_space<vmem>>, vector<8x1xf32>
    tpu.vector_store %arg2[%c0_6, %c0_7], %15 {strides = array<i32>} : memref<8x1xf32, #tpu.memory_space<vmem>>, vector<8x1xf32>,
    %17 = math.sin %14 : vector<8x1xf32>
    %c0_8 = arith.constant 0 : index
    %c0_9 = arith.constant 0 : index
    %18 = vector.load %arg3[%c0_8, %c0_9] : memref<8x1xf32, #tpu.memory_space<vmem>>, vector<8x1xf32>
    tpu.vector_store %arg3[%c0_8, %c0_9], %17 {strides = array<i32>} : memref<8x1xf32, #tpu.memory_space<vmem>>, vector<8x1xf32>,
    %cst_10 = arith.constant 9.99999996E-13 : f32
    %19 = vector.broadcast %cst_10 : f32 to vector<8x1xf32>
    %20 = arith.maximumf %4, %19 : vector<8x1xf32>
    %cst_11 = arith.constant 1.000000e+00 : f32
    %21 = vector.broadcast %cst_11 : f32 to vector<8x1xf32>
    %22 = arith.divf %21, %20 : vector<8x1xf32>
    %23 = vector.broadcast %22 : vector<8x1xf32> to vector<8x512xf32>
    %24 = arith.mulf %0, %23 : vector<8x512xf32>
    %c0_12 = arith.constant 0 : index
    %c0_13 = arith.constant 0 : index
    %25 = vector.load %arg1[%c0_12, %c0_13] : memref<8x512xf32, #tpu.memory_space<vmem>>, vector<8x512xf32>
    tpu.vector_store %arg1[%c0_12, %c0_13], %24 {strides = array<i32>} : memref<8x512xf32, #tpu.memory_space<vmem>>, vector<8x512xf32>,
    %c0_14 = arith.constant 0 : index
    %c0_15 = arith.constant 0 : index
    %26 = vector.load %arg4[%c0_14, %c0_15] : memref<8x1xf32, #tpu.memory_space<vmem>>, vector<8x1xf32>
    tpu.vector_store %arg4[%c0_14, %c0_15], %8 {strides = array<i32>} : memref<8x1xf32, #tpu.memory_space<vmem>>, vector<8x1xf32>,
    return
  }
}

</mosaic_0001>

<bundles_post_ra>
// kernel: tpu_custom_call.1
= control target key start
LH: loop header
LB: loop body
LE: loop exit
PB: predicated region body
PF: predicated region fallthrough
CT: control target
= control target key end

     0   :  { %10 = vsyncpa [#allocation3], 0  ;;  %s444_s0 = inlined_call_operand.hbm [shape: f32[8,512], index: 0, kind: input, shape index: {}]   ;;  %s445_s1 = inlined_call_operand.hbm [shape: f32[8,512], index: 1, kind: output, shape index: {0}]   ;;  %s446_s2 = inlined_call_operand.vmem [shape: f32[8,1], index: 2, kind: output, shape index: {1}]   ;;  %s447_s3 = inlined_call_operand.vmem [shape: f32[8,1], index: 3, kind: output, shape index: {2}]   ;;  %s448_s4 = inlined_call_operand.vmem [shape: f32[8,1], index: 4, kind: output, shape index: {3}]  }
   0x1   :  { %11 = vsyncpa [#allocation4], 0  ;;  %s372_s15 = smov [#allocation2]  }
   0x2   :  { %s18_s16 = sshll.u32 %s372_s15, 4  ;;  %s19_s16 = int_to_ptr.vmem [resolvable:$true] %s18_s16 }
   0x3   :  { %s336_s17 = scalar_lea.vmem %s19_s16, 512  ;;  %p341_p1 = scmp.lt.s32.totalorder %s19_s16, %s19_s16 }
   0x4   :  { %p337_p0 = scmp.ne.s32.totalorder %s19_s16, %s336_s17  ;;  %p342_p2 = scmp.lt.s32.totalorder %s336_s17, %s336_s17 }
   0x6   :  { %p343_p3 = por %p342_p2, %p341_p1 }
   0x8   :  { %p344_p4 = pnand %p343_p3, %p337_p0 }
   0xa   :  { %347 = shalt.err (!%p344_p4)
}
   0xb   :  { %21 = dma.hbm_to_vmem [thread:$0]  %s444_s0, 512, %s19_s16, [#allocation3]  }
   0xc   :  { %368 = dma.done.wait [#allocation3], 512  }
   0xd   :  { %369 = vsyncadd [#allocation3], 4294966784  ;;  %v25_v0 = vld [vmem:[#allocation2] sm:$0xff]  ;;  %v26_v1 = vld [vmem:[#allocation2 + $0x8] sm:$0xff]  ;;  %vm153_vm2 = vcmask 7168   ;;  %s373_s21 = smov [#allocation5]  }
   0xe   :  { %v27_v2 = vld [vmem:[#allocation2 + $0x10] sm:$0xff]  ;;  %v28_v3 = vld [vmem:[#allocation2 + $0x18] sm:$0xff]  ;;  %v29_v4 = vmul.f32 %v25_v0, %v25_v0  ;;  %v30_v5 = vmul.f32 %v26_v1, %v26_v1  ;;  %s278_s22 = sshll.u32 %s373_s21, 4  ;;  %s279_s22 = int_to_ptr.vmem [resolvable:$true] %s278_s22 }
   0xf   :  { %v31_v6 = vmul.f32 %v27_v2, %v27_v2  ;;  %v32_v7 = vmul.f32 %v28_v3, %v28_v3  ;;  %p353_p6 = scmp.lt.s32.totalorder %s279_s22, %s279_s22 }
  0x10   :  { %v33_v8 = vadd.f32 %v30_v5, %v29_v4 }
  0x12   :  { %v34_v9 = vadd.f32 %v33_v8, %v31_v6 }
  0x14   :  { %v35_v10 = vadd.f32 %v34_v9, %v32_v7 }
  0x16   :  { %36 = vadd.xlane.f32.xlu0 %v35_v10 }
  0x9f   :  { %v37_v11 = vpop.xlane.xlu0 %36 }
  0xa0   :  { %320 = vrsqrt.f32 %v37_v11  ;;  %vm40_vm0 = vcmp.eq.f32.partialorder %v37_v11, inf  ;;  %v43_v14 = vand.u32 2147483648, %v37_v11  ;;  %vm42_vm1 = vcmp.eq.f32.partialorder %v37_v11, 0.0 }
  0xad   :  { %v321_v12 = vpop.eup %320 }
  0xae   :  { %v39_v13 = vmul.f32 %v321_v12, %v37_v11 }
  0xb0   :  { %v41_v15 = vsel %vm40_vm0, %v37_v11, %v39_v13 }
  0xb1   :  { %v44_v16 = vsel %vm42_vm1, %v43_v14, %v41_v15 }
  0xb2   :  { %v45_v17 = vmax.f32 %v44_v16, 10.0  ;;  %v260_v18 = vmax.f32 %v44_v16, 1e-12 }
  0xb4   :  { %v46_v19 = vmin.f32 %v45_v17, 110.0  ;;  %322 = vrcp.f32 %v260_v18 }
  0xb6   :  { %v299_v20 = vadd.f32 -10.0, %v46_v19  ;;  %271 = vst.msk [vmem:[%s448_s4] sm:$0xff] %vm153_vm2, %v46_v19  ;;  %s348_s4 = scalar_lea.vmem %s279_s22, 512 }
  0xb7   :  { %p349_p5 = scmp.ne.s32.totalorder %s279_s22, %s348_s4  ;;  %p354_p7 = scmp.lt.s32.totalorder %s348_s4, %s348_s4 }
  0xb8   :  { %v48_v21 = vmul.f32 0.0035, %v299_v20 }
  0xb9   :  { %p355_p8 = por %p354_p7, %p353_p6 }
  0xba   :  { %v412_v22 = vadd.f32 0.45, %v48_v21 }
  0xbb   :  { %p356_p9 = pnand %p355_p8, %p349_p5 }
  0xbc   :  { %v53_v23 = vand.u32 2139095040, %v412_v22  ;;  %v50_v32 = vand.u32 2147483647, %v412_v22 }
  0xbe   :  { %v54_v24 = vshrl.u32 %v53_v23, 23 }
  0xc0   :  { %v300_v25 = vadd.s32 4294967169, %v54_v24 }
  0xc1   :  { %v323_v26 = vpop.eup %322 }
  0xc2   :  { %v60_v27 = vadd.s32 1, %v300_v25  ;;  %v263_v28 = vmul.f32 %v323_v26, %v25_v0  ;;  %v264_v29 = vmul.f32 %v323_v26, %v26_v1  ;;  %v265_v30 = vmul.f32 %v323_v26, %v27_v2 }
  0xc3   :  { %v266_v31 = vmul.f32 %v323_v26, %v28_v3 }
  0xc4   :  { %vm61_vm3 = vcmp.gt.s32.totalorder %v60_v27, 0  ;;  %267 = vst [vmem:[#allocation5] sm:$0xff] %v263_v28  ;;  %268 = vst [vmem:[#allocation5 + $0x8] sm:$0xff] %v264_v29 }
  0xc5   :  { %v62_v33 = vsel %vm61_vm3, %v60_v27, 0  ;;  %269 = vst [vmem:[#allocation5 + $0x10] sm:$0xff] %v265_v30  ;;  %270 = vst [vmem:[#allocation5 + $0x18] sm:$0xff] %v266_v31 }
  0xc6   :  { %v64_v34 = vand.u32 31, %v62_v33 }
  0xc7   :  { %359 = shalt.err (!%p356_p9)
}
  0xc8   :  { %281 = dma.vmem_to_hbm [thread:$0]  %s279_s22, 512, %s445_s1, [#allocation4]   ;;  %v57_v35 = vand.u32 8388607, %v50_v32  ;;  %v65_v36 = vsub.s32 32, %v64_v34  ;;  %v63_v37 = vshrl.u32 %v62_v33, 5  ;;  %vm142_vm3 = vweird.f32 %v412_v22 }
  0xc9   :  { %v374_v38 = vmov 683565275   ;;  %v375_v40 = vmov 2475754826   ;;  %v376_v43 = vmov 2131351028  }
  0xca   :  { %v67_v39 = vshll.u32 %v374_v38, %v64_v34  ;;  %v70_v41 = vshll.u32 %v375_v40, %v64_v34  ;;  %v68_v42 = vshrl.u32 %v375_v40, %v65_v36  ;;  %v71_v44 = vshrl.u32 %v376_v43, %v65_v36 }
  0xcb   :  { %v73_v45 = vshll.u32 %v376_v43, %v64_v34  ;;  %v377_v46 = vmov 2102212464   ;;  %v378_v49 = vmov 920167782   ;;  %v379_v52 = vmov 1326507024  }
  0xcc   :  { %v74_v47 = vshrl.u32 %v377_v46, %v65_v36  ;;  %v76_v48 = vshll.u32 %v377_v46, %v64_v34  ;;  %v77_v50 = vshrl.u32 %v378_v49, %v65_v36  ;;  %v79_v51 = vshll.u32 %v378_v49, %v64_v34 }
  0xcd   :  { %v80_v53 = vshrl.u32 %v379_v52, %v65_v36  ;;  %v58_v54 = vor.u32 8388608, %v57_v35  ;;  %v69_v55 = vor.u32 %v68_v42, %v67_v39  ;;  %v72_v56 = vor.u32 %v71_v44, %v70_v41 }
  0xce   :  { %v75_v57 = vor.u32 %v74_v47, %v73_v45  ;;  %v78_v58 = vor.u32 %v77_v50, %v76_v48  ;;  %vm82_vm4 = vcmp.lt.s32.totalorder %v63_v37, 1  ;;  %vm85_vm5 = vcmp.lt.s32.totalorder %v63_v37, 4 }
  0xcf   :  { %v81_v59 = vor.u32 %v80_v53, %v79_v51  ;;  %v90_v61 = vsel %vm82_vm4, %v69_v55, %v72_v56  ;;  %v66_v63 = vshrl.u32 %v374_v38, %v65_v36  ;;  %vm84_vm6 = vcmp.lt.s32.totalorder %v63_v37, 3 }
  0xd0   :  { %v87_v60 = vsel %vm85_vm5, %v75_v57, 2102212464  ;;  %v94_v62 = vsel %vm82_vm4, %v72_v56, %v75_v57  ;;  %v91_v0 = vsel %vm85_vm5, %v78_v58, 920167782  ;;  %vm83_vm7 = vcmp.lt.s32.totalorder %v63_v37, 2 }
  0xd1   :  { %v95_v1 = vsel %vm85_vm5, %v81_v59, 1326507024  ;;  %v92_v2 = vsel %vm84_vm6, %v75_v57, %v91_v0  ;;  %v98_v4 = vshll.u32 %v58_v54, 8  ;;  %v86_v5 = vsel %vm82_vm4, %v66_v63, %v69_v55 }
  0xd2   :  { %v96_v3 = vsel %vm84_vm6, %v78_v58, %v95_v1  ;;  %v88_v6 = vsel %vm84_vm6, %v72_v56, %v87_v60  ;;  %v93_v7 = vsel %vm83_vm7, %v90_v61, %v92_v2  ;;  %vm52_vm10 = vcmp.lt.s32.totalorder %v412_v22, 0 }
  0xd3   :  { %v97_v8 = vsel %vm83_vm7, %v94_v62, %v96_v3  ;;  %v424_v11 = vmul.u32.u64.low %v98_v4, %v93_v7  ;;  %v425_v12 = vmul.u32.u64.high %v98_v4, %v93_v7, %v424_v11  ;;  %v89_v13 = vsel %vm83_vm7, %v86_v5, %v88_v6 }
  0xd4   :  { %v421_v9 = vmul.u32.u64.low %v98_v4, %v97_v8  ;;  %v422_v10 = vmul.u32.u64.high %v98_v4, %v97_v8, %v421_v9  ;;  %v105_v15 = vmul.u32 %v98_v4, %v89_v13  ;;  %vm51_vm11 = vcmp.le.f32.partialorder %v50_v32, 0.7853982 }
  0xd5   :  { %v108_v14 = vadd.s32 1, %v425_v12 }
  0xd6   :  { %vm107_vm8 = vc.u32 %v422_v10, %v424_v11  ;;  %v106_v28 = vadd.s32 %v424_v11, %v422_v10 }
  0xd7   :  { %v109_v16 = vsel %vm107_vm8, %v108_v14, %v425_v12 }
  0xd8   :  { %v110_v17 = vadd.s32 %v109_v16, %v105_v15 }
  0xda   :  { %v111_v18 = vadd.s32 536870912, %v110_v17 }
  0xdc   :  { %v112_v19 = vshrl.u32 %v111_v18, 30 }
  0xde   :  { %v113_v20 = vshll.u32 %v112_v19, 30  ;;  %v136_v42 = vsub.s32 4, %v112_v19 }
  0xe0   :  { %v114_v21 = vsub.s32 %v110_v17, %v113_v20  ;;  %v137_v45 = vsel %vm52_vm10, %v136_v42, %v112_v19 }
  0xe1   :  { %v139_v46 = vsel %vm51_vm11, 0, %v137_v45 }
  0xe2   :  { %v116_v23 = vsub.s32 0, %v114_v21  ;;  %v248_v47 = vadd.s32 3, %v139_v46  ;;  %v143_v48 = vand.u32 3, %v139_v46 }
  0xe4   :  { %v301_v24 = vmin.u32 %v116_v23, %v114_v21  ;;  %v249_v49 = vand.u32 3, %v248_v47  ;;  %vm148_vm12 = vcmp.eq.s32.totalorder %v143_v48, 2  ;;  %vm145_vm14 = vcmp.eq.s32.totalorder %v143_v48, 0 }
  0xe5   :  { %vm144_vm0 = vcmp.lt.s32.totalorder %v143_v48, 2 }
  0xe6   :  { %v118_v25 = vclz %v301_v24  ;;  %vm254_vm13 = vcmp.eq.s32.totalorder %v249_v49, 2  ;;  %vm251_vm15 = vcmp.eq.s32.totalorder %v249_v49, 0  ;;  %vm250_vm1 = vcmp.lt.s32.totalorder %v249_v49, 2 }
  0xe8   :  { %v302_v26 = vadd.s32 4294967294, %v118_v25 }
  0xea   :  { %vm303_vm9 = vcmp.lt.s32.totalorder %v302_v26, 0 }
  0xeb   :  { %v121_v27 = vsel %vm303_vm9, 0, %v302_v26 }
  0xec   :  { %v122_v29 = vsub.s32 32, %v121_v27  ;;  %v126_v30 = vsub.s32 4294967266, %v121_v27  ;;  %v123_v31 = vshll.u32 %v114_v21, %v121_v27 }
  0xee   :  { %v124_v33 = vshrl.u32 %v106_v28, %v122_v29  ;;  %v127_v34 = vadd.s32 127, %v126_v30 }
  0xf0   :  { %v125_v35 = vor.u32 %v124_v33, %v123_v31  ;;  %v128_v36 = vshll.u32 %v127_v34, 23 }
  0xf2   :  { %v129_v37 = vor.u32 4788187, %v128_v36  ;;  %v132_v39 = vcvt.s32.f32 %v125_v35 }
  0xf4   :  { %v130_v38 = vand.u32 2147483647, %v129_v37 }
  0xf6   :  { %v133_v40 = vmul.f32 %v132_v39, %v130_v38 }
  0xf8   :  { %v134_v41 = vxor.u32 2147483648, %v133_v40 }
  0xfa   :  { %v135_v43 = vsel %vm52_vm10, %v134_v41, %v133_v40 }
  0xfb   :  { %v138_v44 = vsel %vm51_vm11, %v412_v22, %v135_v43 }
  0xfc   :  { %324 = vcosq.f32 %v138_v44 }
  0xfd   :  { %326 = vsinq.f32 %v138_v44 }
 0x109   :  { %v325_v50 = vpop.eup %324 }
 0x10a   :  { %v327_v51 = vpop.eup %326  ;;  %v149_v52 = vxor.u32 2147483648, %v325_v50 }
 0x10b   :  { %v146_v53 = vxor.u32 2147483648, %v327_v51 }
 0x10c   :  { %v150_v54 = vsel %vm148_vm12, %v149_v52, %v327_v51  ;;  %v256_v32 = vsel %vm254_vm13, %v149_v52, %v327_v51 }
 0x10d   :  { %v147_v55 = vsel %vm145_vm14, %v325_v50, %v146_v53  ;;  %v253_v56 = vsel %vm251_vm15, %v325_v50, %v146_v53 }
 0x10e   :  { %v151_v57 = vsel %vm144_vm0, %v147_v55, %v150_v54  ;;  %v257_v58 = vsel %vm250_vm1, %v253_v56, %v256_v32 }
 0x10f   :  { %v152_v59 = vsel %vm142_vm3, nan, %v151_v57  ;;  %v258_v60 = vsel %vm142_vm3, nan, %v257_v58 }
 0x110   :  { %154 = vst.msk [vmem:[%s446_s2] sm:$0xff] %vm153_vm2, %v152_v59  ;;  %259 = vst.msk [vmem:[%s447_s3] sm:$0xff] %vm153_vm2, %v258_v60 }
 0x111   :  { %370 = dma.done.wait [#allocation4], 512  }
 0x112   :  { %371 = vsyncadd [#allocation4], 4294966784 }
 0x113   :  { %297 = vsyncpa [#allocation3], 1 }
 0x114   :  { %298 = vsyncpa [#allocation4], 1 }

</bundles_post_ra>
